<compile_context>
chip_gen: v5e
topology: v5e:2x2
jax: 0.10.0
libtpu: 0.0.40
codegen_flags: <defaults>
</compile_context>

<pallas_src>
import jax
import jax.numpy as jnp
from jax.experimental import pallas as pl
from jax.experimental.pallas import tpu as pltpu


# logical feature dims (torch module) / lane-dense padded hidden & output dims
K, H1, H2, NO = 28 * 28, 300, 100, 10
H1P, H2P, NOP = 384, 128, 128  # 3*128, 128, 128  (K stays at its true 784)


def _round_up(x, m):
    return (x + m - 1) // m * m


def _cdiv(a, b):
    return -(-a // b)


def lenet_kernel(x_ref, w1_ref, b1_ref, w2_ref, b2_ref, w3_ref, b3_ref, o_ref):
    # fc1 + relu: cast the streamed f32 x tile to bf16 right before the MXU dot,
    # accumulate in f32.
    x = x_ref[...].astype(jnp.bfloat16)
    h1 = jnp.dot(x, w1_ref[...], preferred_element_type=jnp.float32)
    h1 = jnp.maximum(h1 + b1_ref[...], 0.0)
    # fc2 + relu
    h2 = jnp.dot(h1.astype(jnp.bfloat16), w2_ref[...],
                 preferred_element_type=jnp.float32)
    h2 = jnp.maximum(h2 + b2_ref[...], 0.0)
    # fcout (no activation); store bf16 logits (lane-dense 128-wide block)
    out = jnp.dot(h2.astype(jnp.bfloat16), w3_ref[...],
                  preferred_element_type=jnp.float32)
    o_ref[...] = (out + b3_ref[...]).astype(o_ref.dtype)


def _select_tm(B, tm_max):
    if B < 64:
        # tiny batch: a single full-extent block (block dim == full dim is legal
        # even when B is not a multiple of 8); no padding, no copy.
        return B
    # large enough to split: aim for >= 4 grid steps (even count keeps both v7x
    # TensorCores busy and overlaps the x DMA with compute); keep tm a multiple
    # of 8 and let the last tile be ragged (Pallas masks its output stores).
    return max(8, min(tm_max, _round_up(_cdiv(B, 4), 8)))


def lenet_forward(x, params, *, tm_max=1024):
    """x: (B, 1, 28, 28) or (B, 784) float32. Returns (B, 10) float32."""
    w1, b1, w2, b2, w3, b3 = params  # (in, out) layout, unpadded, f32
    B = x.shape[0]
    # matches x.view(x.size(0), -1); no padded/cast copy of x is materialized.
    x_flat = x.reshape(B, -1).astype(jnp.float32)

    # weights: bf16, zero-padded only on hidden/output dims to 128 multiples.
    w1p = jnp.zeros((K, H1P), jnp.bfloat16).at[:, :H1].set(w1.astype(jnp.bfloat16))
    w2p = jnp.zeros((H1P, H2P), jnp.bfloat16).at[:H1, :H2].set(w2.astype(jnp.bfloat16))
    w3p = jnp.zeros((H2P, NOP), jnp.bfloat16).at[:H2, :NO].set(w3.astype(jnp.bfloat16))
    b1p = jnp.zeros((1, H1P), jnp.float32).at[:, :H1].set(b1.reshape(1, -1))
    b2p = jnp.zeros((1, H2P), jnp.float32).at[:, :H2].set(b2.reshape(1, -1))
    b3p = jnp.zeros((1, NOP), jnp.float32).at[:, :NO].set(b3.reshape(1, -1))

    tm = _select_tm(B, tm_max)
    grid = (_cdiv(B, tm),)
    const = lambda i: (0, 0)  # weights/biases: same block every step -> VMEM-resident

    # honest advisory cost: real batch, unpadded K, bf16 weights/output.
    flops = 2 * B * (K * H1 + H1 * H2 + H2 * NO)
    bytes_accessed = (B * K * 4                                      # x stream (f32)
                      + (K * H1P + H1P * H2P + H2P * NOP) * 2        # weights (bf16)
                      + (H1P + H2P + NOP) * 4                        # biases (f32)
                      + B * NOP * 2)                                 # output (bf16)

    out = pl.pallas_call(
        lenet_kernel,
        out_shape=jax.ShapeDtypeStruct((B, NOP), jnp.bfloat16),
        grid_spec=pltpu.PrefetchScalarGridSpec(
            num_scalar_prefetch=0,
            grid=grid,
            in_specs=[
                pl.BlockSpec((tm, K), lambda i: (i, 0)),    # x tile, streamed f32
                pl.BlockSpec((K, H1P), const),              # w1 (resident)
                pl.BlockSpec((1, H1P), const),              # b1
                pl.BlockSpec((H1P, H2P), const),            # w2
                pl.BlockSpec((1, H2P), const),              # b2
                pl.BlockSpec((H2P, NOP), const),            # w3
                pl.BlockSpec((1, NOP), const),              # b3
            ],
            out_specs=pl.BlockSpec((tm, NOP), lambda i: (i, 0)),
        ),
        compiler_params=pltpu.CompilerParams(
            dimension_semantics=("parallel",),   # shards batch across TCs on v7x
            vmem_limit_bytes=32 * 1024 * 1024,   # ~14 MiB actual footprint @ tm=1024
        ),
        cost_estimate=pl.CostEstimate(
            flops=flops, transcendentals=0, bytes_accessed=bytes_accessed),
    )(x_flat, w1p, b1p, w2p, b2p, w3p, b3p)

    # slice away the lane padding and upcast the bf16 logits to f32.
    return out[:, :NO].astype(jnp.float32)


def xavier_normal(key, fan_in, fan_out):
    # torch.nn.init.xavier_normal_: std = gain * sqrt(2 / (fan_in + fan_out)), gain=1
    std = jnp.sqrt(2.0 / (fan_in + fan_out))
    # stored as (in_features, out_features) so the kernel computes x @ W (== x @ W.T in torch)
    return jax.random.normal(key, (fan_in, fan_out), dtype=jnp.float32) * std


def init_params(key):
    k1, k2, k3 = jax.random.split(key, 3)
    w1 = xavier_normal(k1, K, H1)
    b1 = jnp.zeros((1, H1), dtype=jnp.float32)
    w2 = xavier_normal(k2, H1, H2)
    b2 = jnp.zeros((1, H2), dtype=jnp.float32)
    w3 = xavier_normal(k3, H2, NO)
    b3 = jnp.zeros((1, NO), dtype=jnp.float32)
    return (w1, b1, w2, b2, w3, b3)


if __name__ == "__main__":
    key = jax.random.PRNGKey(0)
    pkey, xkey = jax.random.split(key)
    params = init_params(pkey)

    # small batch, MNIST-shaped input (fc1 fixes the feature dim at 28*28)
    x = jax.random.normal(xkey, (2, 1, 28, 28), dtype=jnp.float32)

    out = lenet_forward(x, params)
    out = jax.block_until_ready(out)

    # sanity check against pure-JAX f32 reference (bf16 matmuls/output loosen tolerance)
    w1, b1, w2, b2, w3, b3 = params
    xf = x.reshape(x.shape[0], -1)
    ref = jnp.maximum(xf @ w1 + b1, 0.0)
    ref = jnp.maximum(ref @ w2 + b2, 0.0)
    ref = ref @ w3 + b3
    assert out.shape == (2, 10)
    assert jnp.allclose(out, ref, atol=5e-2, rtol=5e-2), \
        f"max abs err {jnp.max(jnp.abs(out - ref))}"

    print("KERNEL_OK")
</pallas_src>

<mosaic_0001>
module attributes {stable_mosaic.version = 11 : i64} {
  func.func @lenet_kernel(%arg0: i32, %arg1: memref<2x784xf32, #tpu.memory_space<vmem>>, %arg2: memref<784x384xbf16, #tpu.memory_space<vmem>>, %arg3: memref<1x384xf32, #tpu.memory_space<vmem>>, %arg4: memref<384x128xbf16, #tpu.memory_space<vmem>>, %arg5: memref<1x128xf32, #tpu.memory_space<vmem>>, %arg6: memref<128x128xbf16, #tpu.memory_space<vmem>>, %arg7: memref<1x128xf32, #tpu.memory_space<vmem>>, %arg8: memref<2x128xbf16, #tpu.memory_space<vmem>>) attributes {dimension_semantics = [#tpu.dimension_semantics<parallel>], iteration_bounds = array<i64: 1>, scalar_prefetch = 0 : i64, scratch_operands = 0 : i64, tpu.core_type = #tpu.core_type<tc>, window_params = [{transform_indices = @transform_0, window_bounds = array<i64: 2, 784>}, {pipeline_mode = #tpu.pipeline_mode<synchronous>, transform_indices = @transform_1, window_bounds = array<i64: 784, 384>}, {pipeline_mode = #tpu.pipeline_mode<synchronous>, transform_indices = @transform_2, window_bounds = array<i64: 1, 384>}, {pipeline_mode = #tpu.pipeline_mode<synchronous>, transform_indices = @transform_3, window_bounds = array<i64: 384, 128>}, {pipeline_mode = #tpu.pipeline_mode<synchronous>, transform_indices = @transform_4, window_bounds = array<i64: 1, 128>}, {pipeline_mode = #tpu.pipeline_mode<synchronous>, transform_indices = @transform_5, window_bounds = array<i64: 128, 128>}, {pipeline_mode = #tpu.pipeline_mode<synchronous>, transform_indices = @transform_6, window_bounds = array<i64: 1, 128>}, {transform_indices = @transform_7, window_bounds = array<i64: 2, 128>}]} {
    %c0 = arith.constant 0 : index
    %c0_0 = arith.constant 0 : index
    %0 = vector.load %arg1[%c0, %c0_0] : memref<2x784xf32, #tpu.memory_space<vmem>>, vector<2x784xf32>
    %1 = arith.truncf %0 : vector<2x784xf32> to vector<2x784xbf16>
    %c0_1 = arith.constant 0 : index
    %c0_2 = arith.constant 0 : index
    %2 = vector.load %arg2[%c0_1, %c0_2] : memref<784x384xbf16, #tpu.memory_space<vmem>>, vector<784x384xbf16>
    %cst = arith.constant dense<0.000000e+00> : vector<2x384xf32>
    %3 = tpu.matmul %1, %2, %cst {dimension_numbers = #tpu.dot_dimension_numbers<[1], [0], [0], [1], [0, 0, 1, 1], [], []>} : vector<2x784xbf16>, vector<784x384xbf16>, vector<2x384xf32> -> vector<2x384xf32>
    %c0_3 = arith.constant 0 : index
    %c0_4 = arith.constant 0 : index
    %4 = vector.load %arg3[%c0_3, %c0_4] : memref<1x384xf32, #tpu.memory_space<vmem>>, vector<1x384xf32>
    %5 = vector.broadcast %4 : vector<1x384xf32> to vector<2x384xf32>
    %6 = arith.addf %3, %5 : vector<2x384xf32>
    %cst_5 = arith.constant 0.000000e+00 : f32
    %7 = vector.broadcast %cst_5 : f32 to vector<2x384xf32>
    %8 = arith.maximumf %6, %7 : vector<2x384xf32>
    %9 = arith.truncf %8 : vector<2x384xf32> to vector<2x384xbf16>
    %c0_6 = arith.constant 0 : index
    %c0_7 = arith.constant 0 : index
    %10 = vector.load %arg4[%c0_6, %c0_7] : memref<384x128xbf16, #tpu.memory_space<vmem>>, vector<384x128xbf16>
    %cst_8 = arith.constant dense<0.000000e+00> : vector<2x128xf32>
    %11 = tpu.matmul %9, %10, %cst_8 {dimension_numbers = #tpu.dot_dimension_numbers<[1], [0], [0], [1], [0, 0, 1, 1], [], []>} : vector<2x384xbf16>, vector<384x128xbf16>, vector<2x128xf32> -> vector<2x128xf32>
    %c0_9 = arith.constant 0 : index
    %c0_10 = arith.constant 0 : index
    %12 = vector.load %arg5[%c0_9, %c0_10] : memref<1x128xf32, #tpu.memory_space<vmem>>, vector<1x128xf32>
    %13 = vector.broadcast %12 : vector<1x128xf32> to vector<2x128xf32>
    %14 = arith.addf %11, %13 : vector<2x128xf32>
    %cst_11 = arith.constant 0.000000e+00 : f32
    %15 = vector.broadcast %cst_11 : f32 to vector<2x128xf32>
    %16 = arith.maximumf %14, %15 : vector<2x128xf32>
    %17 = arith.truncf %16 : vector<2x128xf32> to vector<2x128xbf16>
    %c0_12 = arith.constant 0 : index
    %c0_13 = arith.constant 0 : index
    %18 = vector.load %arg6[%c0_12, %c0_13] : memref<128x128xbf16, #tpu.memory_space<vmem>>, vector<128x128xbf16>
    %cst_14 = arith.constant dense<0.000000e+00> : vector<2x128xf32>
    %19 = tpu.matmul %17, %18, %cst_14 {dimension_numbers = #tpu.dot_dimension_numbers<[1], [0], [0], [1], [0, 0, 1, 1], [], []>} : vector<2x128xbf16>, vector<128x128xbf16>, vector<2x128xf32> -> vector<2x128xf32>
    %c0_15 = arith.constant 0 : index
    %c0_16 = arith.constant 0 : index
    %20 = vector.load %arg7[%c0_15, %c0_16] : memref<1x128xf32, #tpu.memory_space<vmem>>, vector<1x128xf32>
    %21 = vector.broadcast %20 : vector<1x128xf32> to vector<2x128xf32>
    %22 = arith.addf %19, %21 : vector<2x128xf32>
    %23 = arith.truncf %22 : vector<2x128xf32> to vector<2x128xbf16>
    %c0_17 = arith.constant 0 : index
    %c0_18 = arith.constant 0 : index
    %24 = vector.load %arg8[%c0_17, %c0_18] : memref<2x128xbf16, #tpu.memory_space<vmem>>, vector<2x128xbf16>
    tpu.vector_store %arg8[%c0_17, %c0_18], %23 {strides = array<i32>} : memref<2x128xbf16, #tpu.memory_space<vmem>>, vector<2x128xbf16>,
    return
  }
  func.func @transform_0(%arg0: i32) -> (i32, i32) {
    %c0_i32 = arith.constant 0 : i32
    %c0_i32_0 = arith.constant 0 : i32
    return %arg0, %c0_i32 : i32, i32
  }
  func.func @transform_1(%arg0: i32) -> (i32, i32) {
    %c0_i32 = arith.constant 0 : i32
    %c0_i32_0 = arith.constant 0 : i32
    %c0_i32_1 = arith.constant 0 : i32
    return %c0_i32, %c0_i32_0 : i32, i32
  }
  func.func @transform_2(%arg0: i32) -> (i32, i32) {
    %c0_i32 = arith.constant 0 : i32
    %c0_i32_0 = arith.constant 0 : i32
    %c0_i32_1 = arith.constant 0 : i32
    return %c0_i32, %c0_i32_0 : i32, i32
  }
  func.func @transform_3(%arg0: i32) -> (i32, i32) {
    %c0_i32 = arith.constant 0 : i32
    %c0_i32_0 = arith.constant 0 : i32
    %c0_i32_1 = arith.constant 0 : i32
    return %c0_i32, %c0_i32_0 : i32, i32
  }
  func.func @transform_4(%arg0: i32) -> (i32, i32) {
    %c0_i32 = arith.constant 0 : i32
    %c0_i32_0 = arith.constant 0 : i32
    %c0_i32_1 = arith.constant 0 : i32
    return %c0_i32, %c0_i32_0 : i32, i32
  }
  func.func @transform_5(%arg0: i32) -> (i32, i32) {
    %c0_i32 = arith.constant 0 : i32
    %c0_i32_0 = arith.constant 0 : i32
    %c0_i32_1 = arith.constant 0 : i32
    return %c0_i32, %c0_i32_0 : i32, i32
  }
  func.func @transform_6(%arg0: i32) -> (i32, i32) {
    %c0_i32 = arith.constant 0 : i32
    %c0_i32_0 = arith.constant 0 : i32
    %c0_i32_1 = arith.constant 0 : i32
    return %c0_i32, %c0_i32_0 : i32, i32
  }
  func.func @transform_7(%arg0: i32) -> (i32, i32) {
    %c0_i32 = arith.constant 0 : i32
    %c0_i32_0 = arith.constant 0 : i32
    return %arg0, %c0_i32 : i32, i32
  }
}

</mosaic_0001>

<bundles_post_ra>
// kernel: tpu_custom_call.1
= control target key start
LH: loop header
LB: loop body
LE: loop exit
PB: predicated region body
PF: predicated region fallthrough
CT: control target
= control target key end

     0   :  { %12 = vsyncpa [#allocation3], 0  ;;  %s2919_s0 = inlined_call_operand.hbm [shape: f32[2,784], index: 0, kind: input, shape index: {}]   ;;  %s2920_s1 = inlined_call_operand.hbm [shape: bf16[784,384], index: 1, kind: input, shape index: {}]   ;;  %s2921_s2 = inlined_call_operand.hbm [shape: f32[1,384], index: 2, kind: input, shape index: {}]   ;;  %s2922_s3 = inlined_call_operand.hbm [shape: bf16[384,128], index: 3, kind: input, shape index: {}]   ;;  %s2923_s4 = inlined_call_operand.vmem [shape: f32[1,128], index: 4, kind: input, shape index: {}]   ;;  %s2924_s5 = inlined_call_operand.hbm [shape: bf16[128,128], index: 5, kind: input, shape index: {}]   ;;  %s2925_s6 = inlined_call_operand.vmem [shape: f32[1,128], index: 6, kind: input, shape index: {}]   ;;  %s2926_s7 = inlined_call_operand.hbm [shape: bf16[2,128], index: 7, kind: output, shape index: {}]  }
   0x1   :  { %13 = vsyncpa [#allocation6], 0 }
   0x2   :  { %14 = vsyncpa [#allocation9], 0  ;;  %s31_s26 = sshll.u32 %s2920_s1, 4  ;;  %s32_s26 = int_to_ptr.hbm [resolvable:$true] %s31_s26 }
   0x3   :  { %15 = vsyncpa [#allocation4], 0  ;;  %s2802_s27 = smov [#allocation5]   ;;  %s55_s8 = sshll.u32 %s2922_s3, 4  ;;  %s56_s8 = int_to_ptr.hbm [resolvable:$true] %s55_s8 }
   0x4   :  { %s33_s28 = sshll.u32 %s2802_s27, 4  ;;  %s2803_s9 = smov 192   ;;  %s34_s28 = int_to_ptr.vmem [resolvable:$true] %s33_s28 }
   0x5   :  { %s2804_s10 = smov 12   ;;  %s2805_s11 = smov [#allocation8]  }
   0x6   :  { %39 = dma.hbm_to_vmem [thread:$0]  %s32_s26, 18816, %s34_s28, [#allocation6], %s2803_s9, %s2803_s9, %s2804_s10  }
   0x7   :  { %s57_s12 = sshll.u32 %s2805_s11, 4  ;;  %s2806_s13 = smov 64   ;;  %s58_s12 = int_to_ptr.vmem [resolvable:$true] %s57_s12 }
   0x8   :  { %s2807_s14 = smov 4   ;;  %s21_s16 = sshll.u32 %s2919_s0, 4  ;;  %s22_s16 = int_to_ptr.hbm [resolvable:$true] %s21_s16 }
   0x9   :  { %63 = dma.hbm_to_vmem [thread:$0]  %s56_s8, 3072, %s58_s12, [#allocation9], %s2806_s13, %s2806_s13, %s2807_s14  }
   0xa   :  { %s2808_s17 = smov [#allocation2]   ;;  %s45_s20 = sshll.u32 %s2921_s2, 4  ;;  %s46_s20 = int_to_ptr.hbm [resolvable:$true] %s45_s20 }
   0xb   :  { %s23_s18 = sshll.u32 %s2808_s17, 4  ;;  %s2809_s21 = smov [#allocation7]   ;;  %s24_s18 = int_to_ptr.vmem [resolvable:$true] %s23_s18 }
   0xc   :  { %26 = dma.hbm_to_vmem [thread:$0]  %s22_s16, 224, %s24_s18, [#allocation3]  }
   0xd   :  { %s47_s22 = sshll.u32 %s2809_s21, 4  ;;  %s70_s25 = sshll.u32 %s2924_s5, 4  ;;  %s48_s22 = int_to_ptr.vmem [resolvable:$true] %s47_s22  ;;  %s71_s25 = int_to_ptr.hbm [resolvable:$true] %s70_s25 }
   0xe   :  { %50 = dma.hbm_to_vmem [thread:$0]  %s46_s20, 48, %s48_s22, [#allocation6]  }
   0xf   :  { %s2810_s0 = smov [#allocation10]  }
  0x10   :  { %s72_s26 = sshll.u32 %s2810_s0, 4  ;;  %s73_s26 = int_to_ptr.vmem [resolvable:$true] %s72_s26 }
  0x11   :  { %78 = dma.hbm_to_vmem [thread:$0]  %s71_s25, 1024, %s73_s26, [#allocation9], %s2806_s13, %s2806_s13, %s2807_s14  }
  0x12   :  { %2794 = dma.done.wait [#allocation3], 224  }
  0x13   :  { %2795 = vsyncadd [#allocation3], 4294967072 }
  0x14   :  { %2796 = dma.done.wait [#allocation6], 18864  }
  0x15   :  { %2797 = vsyncadd [#allocation6], 4294948432 }
  0x16   :  { %2798 = dma.done.wait [#allocation9], 4096  }
  0x17   :  { %2799 = vsyncadd [#allocation9], 4294963200  ;;  %v1826_v0 = vld [vmem:[#allocation5 + $0xa8] sm:$0xf]  ;;  %v2481_v1 = vld [vmem:[#allocation5 + $0xb0] sm:$0xf0] }
  0x18   :  { %v1922_v2 = vld [vmem:[#allocation5 + $0x168] sm:$0xf]  ;;  %v1827_v3 = vor.u32 %v2481_v1, %v1826_v0  ;;  %v2505_v4 = vld [vmem:[#allocation5 + $0x170] sm:$0xf0]  ;;  %v1814_v9 = vld [vmem:[#allocation5 + $0x90] sm:$0xf] }
  0x19   :  { %v2114_v5 = vld [vmem:[#allocation5 + $0x2e8] sm:$0xf]  ;;  %v2553_v6 = vld [vmem:[#allocation5 + $0x2f0] sm:$0xf0]  ;;  %v1923_v7 = vor.u32 %v2505_v4, %v1922_v2  ;;  %v2478_v10 = vld [vmem:[#allocation5 + $0x98] sm:$0xf0] }
  0x1a   :  { %v2115_v8 = vor.u32 %v2553_v6, %v2114_v5  ;;  %v1910_v11 = vld [vmem:[#allocation5 + $0x150] sm:$0xf]  ;;  %1122 = vmatpush.bf16.msra.mxu0 %v1827_v3  ;;  %v1815_v12 = vor.u32 %v2478_v10, %v1814_v9  ;;  %v2502_v13 = vld [vmem:[#allocation5 + $0x158] sm:$0xf0]  ;;  %v2018_v18 = vld [vmem:[#allocation5 + $0x228] sm:$0xf] }
  0x1b   :  { %v2102_v14 = vld [vmem:[#allocation5 + $0x2d0] sm:$0xf]  ;;  %v2550_v15 = vld [vmem:[#allocation5 + $0x2d8] sm:$0xf0]  ;;  %1135 = vmatpush.bf16.msra.mxu1 %v1923_v7  ;;  %v1911_v16 = vor.u32 %v2502_v13, %v1910_v11  ;;  %v2529_v19 = vld [vmem:[#allocation5 + $0x230] sm:$0xf0] }
  0x1c   :  { %1161 = vmatpush.bf16.msra.mxu3 %v2115_v8  ;;  %v2103_v17 = vor.u32 %v2550_v15, %v2102_v14  ;;  %v1802_v20 = vld [vmem:[#allocation5 + $0x78] sm:$0xf]  ;;  %v2019_v21 = vor.u32 %v2529_v19, %v2018_v18  ;;  %v2475_v22 = vld [vmem:[#allocation5 + $0x80] sm:$0xf0]  ;;  %v2006_v27 = vld [vmem:[#allocation5 + $0x210] sm:$0xf] }
  0x1d   :  { %v1898_v23 = vld [vmem:[#allocation5 + $0x138] sm:$0xf]  ;;  %v2499_v24 = vld [vmem:[#allocation5 + $0x140] sm:$0xf0]  ;;  %v1803_v28 = vor.u32 %v2475_v22, %v1802_v20  ;;  %v2526_v29 = vld [vmem:[#allocation5 + $0x218] sm:$0xf0] }
  0x1e   :  { %v2090_v25 = vld [vmem:[#allocation5 + $0x2b8] sm:$0xf]  ;;  %v2547_v26 = vld [vmem:[#allocation5 + $0x2c0] sm:$0xf0]  ;;  %1123 = vmatpush.bf16.msra.mxu0 %v1815_v12  ;;  %1148 = vmatpush.bf16.msra.mxu2 %v2019_v21  ;;  %v1790_v30 = vld [vmem:[#allocation5 + $0x60] sm:$0xf]  ;;  %v1899_v32 = vor.u32 %v2499_v24, %v1898_v23  ;;  %v2007_v34 = vor.u32 %v2526_v29, %v2006_v27 }
  0x1f   :  { %v2472_v31 = vld [vmem:[#allocation5 + $0x68] sm:$0xf0]  ;;  %1136 = vmatpush.bf16.msra.mxu1 %v1911_v16  ;;  %v2091_v33 = vor.u32 %v2547_v26, %v2090_v25  ;;  %v1886_v35 = vld [vmem:[#allocation5 + $0x120] sm:$0xf]  ;;  %v1994_v39 = vld [vmem:[#allocation5 + $0x1f8] sm:$0xf] }
  0x20   :  { %1162 = vmatpush.bf16.msra.mxu3 %v2103_v17  ;;  %v2496_v36 = vld [vmem:[#allocation5 + $0x128] sm:$0xf0]  ;;  %v2078_v37 = vld [vmem:[#allocation5 + $0x2a0] sm:$0xf]  ;;  %v2523_v40 = vld [vmem:[#allocation5 + $0x200] sm:$0xf0]  ;;  %v1791_v41 = vor.u32 %v2472_v31, %v1790_v30 }
  0x21   :  { %v2544_v38 = vld [vmem:[#allocation5 + $0x2a8] sm:$0xf0]  ;;  %v1995_v42 = vor.u32 %v2523_v40, %v1994_v39  ;;  %v1778_v43 = vld [vmem:[#allocation5 + $0x48] sm:$0xf]  ;;  %v2469_v44 = vld [vmem:[#allocation5 + $0x50] sm:$0xf0]  ;;  %v1887_v45 = vor.u32 %v2496_v36, %v1886_v35 }
  0x22   :  { %1124 = vmatpush.bf16.msra.mxu0 %v1803_v28  ;;  %1149 = vmatpush.bf16.msra.mxu2 %v2007_v34  ;;  %v2079_v46 = vor.u32 %v2544_v38, %v2078_v37  ;;  %v1874_v47 = vld [vmem:[#allocation5 + $0x108] sm:$0xf]  ;;  %v1982_v48 = vld [vmem:[#allocation5 + $0x1e0] sm:$0xf]  ;;  %v2520_v49 = vld [vmem:[#allocation5 + $0x1e8] sm:$0xf0]  ;;  %v1779_v53 = vor.u32 %v2469_v44, %v1778_v43 }
  0x23   :  { %1137 = vmatpush.bf16.msra.mxu1 %v1899_v32  ;;  %v2493_v50 = vld [vmem:[#allocation5 + $0x110] sm:$0xf0]  ;;  %v2066_v51 = vld [vmem:[#allocation5 + $0x288] sm:$0xf]  ;;  %v1983_v54 = vor.u32 %v2520_v49, %v1982_v48  ;;  %v1766_v55 = vld [vmem:[#allocation5 + $0x30] sm:$0xf] }
  0x24   :  { %1163 = vmatpush.bf16.msra.mxu3 %v2091_v33  ;;  %v2541_v52 = vld [vmem:[#allocation5 + $0x290] sm:$0xf0]  ;;  %v2466_v56 = vld [vmem:[#allocation5 + $0x38] sm:$0xf0]  ;;  %v1875_v57 = vor.u32 %v2493_v50, %v1874_v47  ;;  %v1862_v59 = vld [vmem:[#allocation5 + $0xf0] sm:$0xf] }
  0x25   :  { %v2067_v58 = vor.u32 %v2541_v52, %v2066_v51  ;;  %v1970_v60 = vld [vmem:[#allocation5 + $0x1c8] sm:$0xf]  ;;  %v2517_v61 = vld [vmem:[#allocation5 + $0x1d0] sm:$0xf0]  ;;  %v2490_v62 = vld [vmem:[#allocation5 + $0xf8] sm:$0xf0]  ;;  %v1767_v1 = vor.u32 %v2466_v56, %v1766_v55 }
  0x26   :  { %1125 = vmatpush.bf16.msra.mxu0 %v1791_v41  ;;  %1150 = vmatpush.bf16.msra.mxu2 %v1995_v42  ;;  %v2054_v63 = vld [vmem:[#allocation5 + $0x270] sm:$0xf]  ;;  %v2538_v0 = vld [vmem:[#allocation5 + $0x278] sm:$0xf0]  ;;  %v1971_v2 = vor.u32 %v2517_v61, %v1970_v60  ;;  %v1754_v3 = vld [vmem:[#allocation5 + $0x18] sm:$0xf]  ;;  %v1863_v5 = vor.u32 %v2490_v62, %v1862_v59 }
  0x27   :  { %1138 = vmatpush.bf16.msra.mxu1 %v1887_v45  ;;  %v2463_v4 = vld [vmem:[#allocation5 + $0x20] sm:$0xf0]  ;;  %v2055_v6 = vor.u32 %v2538_v0, %v2054_v63  ;;  %v1850_v7 = vld [vmem:[#allocation5 + $0xd8] sm:$0xf]  ;;  %v1958_v8 = vld [vmem:[#allocation5 + $0x1b0] sm:$0xf] }
  0x28   :  { %1164 = vmatpush.bf16.msra.mxu3 %v2079_v46  ;;  %v2514_v9 = vld [vmem:[#allocation5 + $0x1b8] sm:$0xf0]  ;;  %v2487_v10 = vld [vmem:[#allocation5 + $0xe0] sm:$0xf0]  ;;  %v2042_v11 = vld [vmem:[#allocation5 + $0x258] sm:$0xf]  ;;  %v1755_v14 = vor.u32 %v2463_v4, %v1754_v3 }
  0x29   :  { %v2535_v12 = vld [vmem:[#allocation5 + $0x260] sm:$0xf0]  ;;  %v1742_v13 = vld [vmem:[#allocation5] sm:$0xf]  ;;  %v1959_v15 = vor.u32 %v2514_v9, %v1958_v8  ;;  %v2460_v16 = vld [vmem:[#allocation5 + $0x8] sm:$0xf0]  ;;  %v1851_v19 = vor.u32 %v2487_v10, %v1850_v7 }
  0x2a   :  { %1126 = vmatpush.bf16.msra.mxu0 %v1779_v53  ;;  %1151 = vmatpush.bf16.msra.mxu2 %v1983_v54  ;;  %v1838_v17 = vld [vmem:[#allocation5 + $0xc0] sm:$0xf]  ;;  %v2484_v18 = vld [vmem:[#allocation5 + $0xc8] sm:$0xf0]  ;;  %v2043_v20 = vor.u32 %v2535_v12, %v2042_v11  ;;  %v1946_v22 = vld [vmem:[#allocation5 + $0x198] sm:$0xf]  ;;  %v1743_v30 = vor.u32 %v2460_v16, %v1742_v13 }
  0x2b   :  { %1139 = vmatpush.bf16.msra.mxu1 %v1875_v57  ;;  %v2030_v21 = vld [vmem:[#allocation5 + $0x240] sm:$0xf]  ;;  %v2511_v23 = vld [vmem:[#allocation5 + $0x1a0] sm:$0xf0]  ;;  %v2532_v24 = vld [vmem:[#allocation5 + $0x248] sm:$0xf0]  ;;  %v1839_v34 = vor.u32 %v2484_v18, %v1838_v17 }
  0x2c   :  { %1165 = vmatpush.bf16.msra.mxu3 %v2067_v58  ;;  %v2210_v25 = vld [vmem:[#allocation5 + $0x3a8] sm:$0xf]  ;;  %v2577_v26 = vld [vmem:[#allocation5 + $0x3b0] sm:$0xf0]  ;;  %v1947_v31 = vor.u32 %v2511_v23, %v1946_v22  ;;  %v2480_v32 = vld [vmem:[#allocation5 + $0xac] sm:$0xf]  ;;  %v2031_v35 = vor.u32 %v2532_v24, %v2030_v21 }
  0x2d   :  { %v2306_v27 = vld [vmem:[#allocation5 + $0x468] sm:$0xf]  ;;  %v2601_v28 = vld [vmem:[#allocation5 + $0x470] sm:$0xf0]  ;;  %v1828_v33 = vld [vmem:[#allocation5 + $0xb4] sm:$0xf0]  ;;  %v2211_v38 = vor.u32 %v2577_v26, %v2210_v25 }
  0x2e   :  { %1127 = vmatpush.bf16.msra.mxu0 %v1767_v1  ;;  %1152 = vmatpush.bf16.msra.mxu2 %v1971_v2  ;;  %v102_v29 = vld [vmem:[#allocation2] sm:$0xff]  ;;  %v1934_v36 = vld [vmem:[#allocation5 + $0x180] sm:$0xf]  ;;  %v2508_v37 = vld [vmem:[#allocation5 + $0x188] sm:$0xf0]  ;;  %v2307_v39 = vor.u32 %v2601_v28, %v2306_v27  ;;  %v1831_v43 = vor.u32 %v2480_v32, %v1828_v33  ;;  %vm1118_vm0 = vcmask 130048  }
  0x2f   :  { %1140 = vmatpush.bf16.msra.mxu1 %v1863_v5  ;;  %106 = vst [vmem:[#allocation1] ss:$4 sm:$0xff] %v102_v29  ;;  %v2198_v40 = vld [vmem:[#allocation5 + $0x390] sm:$0xf]  ;;  %v2318_v41 = vld [vmem:[#allocation5 + $0x480] sm:$0xf]  ;;  %v1935_v47 = vor.u32 %v2508_v37, %v1934_v36 }
  0x30   :  { %1166 = vmatpush.bf16.msra.mxu3 %v2055_v6  ;;  %v2604_v42 = vld [vmem:[#allocation5 + $0x488] sm:$0xf0]  ;;  %v2574_v44 = vld [vmem:[#allocation5 + $0x398] sm:$0xf0]  ;;  %v2294_v45 = vld [vmem:[#allocation5 + $0x450] sm:$0xf] }
  0x31   :  { %v2598_v46 = vld [vmem:[#allocation5 + $0x458] sm:$0xf0]  ;;  %v2477_v48 = vld [vmem:[#allocation5 + $0x94] sm:$0xf]  ;;  %v1816_v49 = vld [vmem:[#allocation5 + $0x9c] sm:$0xf0]  ;;  %v2319_v50 = vor.u32 %v2604_v42, %v2318_v41  ;;  %v2199_v54 = vor.u32 %v2574_v44, %v2198_v40 }
  0x32   :  { %1128 = vmatpush.bf16.msra.mxu0 %v1755_v14  ;;  %1153 = vmatpush.bf16.msra.mxu2 %v1959_v15  ;;  %v2186_v51 = vld [vmem:[#allocation5 + $0x378] sm:$0xf]  ;;  %v2504_v52 = vld [vmem:[#allocation5 + $0x16c] sm:$0xf]  ;;  %v2295_v55 = vor.u32 %v2598_v46, %v2294_v45  ;;  %v2571_v56 = vld [vmem:[#allocation5 + $0x380] sm:$0xf0]  ;;  %v1819_v59 = vor.u32 %v2477_v48, %v1816_v49 }
  0x33   :  { %1141 = vmatpush.bf16.msra.mxu1 %v1851_v19  ;;  %v1924_v53 = vld [vmem:[#allocation5 + $0x174] sm:$0xf0]  ;;  %v2595_v58 = vld [vmem:[#allocation5 + $0x440] sm:$0xf0]  ;;  %v2474_v63 = vld [vmem:[#allocation5 + $0x7c] sm:$0xf]  ;;  %v2187_v6 = vor.u32 %v2571_v56, %v2186_v51 }
  0x34   :  { %1167 = vmatpush.bf16.msra.mxu3 %v2043_v20  ;;  %v2282_v57 = vld [vmem:[#allocation5 + $0x438] sm:$0xf]  ;;  %v1804_v0 = vld [vmem:[#allocation5 + $0x84] sm:$0xf0]  ;;  %v1927_v1 = vor.u32 %v2504_v52, %v1924_v53  ;;  %v2501_v2 = vld [vmem:[#allocation5 + $0x154] sm:$0xf] }
  0x35   :  { %v1912_v4 = vld [vmem:[#allocation5 + $0x15c] sm:$0xf0]  ;;  %v2283_v7 = vor.u32 %v2595_v58, %v2282_v57  ;;  %v2568_v9 = vld [vmem:[#allocation5 + $0x368] sm:$0xf0]  ;;  %v1807_v11 = vor.u32 %v2474_v63, %v1804_v0  ;;  %v2471_v14 = vld [vmem:[#allocation5 + $0x64] sm:$0xf] }
  0x36   :  { %1129 = vmatpush.bf16.msra.mxu0 %v1743_v30  ;;  %1154 = vmatpush.bf16.msra.mxu2 %v1947_v31  ;;  %v111_v60 = vld.sshfl [vmem:[#allocation1 + $0x10] sm:$0xff pattern:$0x73625140]  ;;  %v109_v61 = vld.sshfl [vmem:[#allocation1] sm:$0xff pattern:$0x73625140]  ;;  %v1915_v16 = vor.u32 %v2501_v2, %v1912_v4 }
  0x37   :  { %1142 = vmatpush.bf16.msra.mxu1 %v1839_v34  ;;  %v2867_v62 = vpack.c.bf16 %v111_v60, %v111_v60  ;;  %v2869_v3 = vpack.c.bf16 %v109_v61, %v109_v61  ;;  %v110_v5 = vld.sshfl [vmem:[#allocation1 + $0x8] sm:$0xff pattern:$0x73625140]  ;;  %v2174_v8 = vld [vmem:[#allocation5 + $0x360] sm:$0xf]  ;;  %s2811_s29 = smov [#allocation11]  }
  0x38   :  { %1168 = vmatpush.bf16.msra.mxu3 %v2031_v35  ;;  %v2871_v10 = vpack.c.bf16 %v110_v5, %v110_v5  ;;  %v2270_v12 = vld [vmem:[#allocation5 + $0x420] sm:$0xf]  ;;  %v2592_v13 = vld [vmem:[#allocation5 + $0x428] sm:$0xf0]  ;;  %v1792_v15 = vld [vmem:[#allocation5 + $0x6c] sm:$0xf0]  ;;  %v2175_v21 = vor.u32 %v2568_v9, %v2174_v8 }
  0x39   :  { %1130 = vmatmul.bf16.vlgmr.msra.gmra.mxu0 %v2869_v3  ;;  %v112_v17 = vld.sshfl [vmem:[#allocation1 + $0x18] sm:$0xff pattern:$0x73625140]  ;;  %v2498_v18 = vld [vmem:[#allocation5 + $0x13c] sm:$0xf]  ;;  %v2271_v22 = vor.u32 %v2592_v13, %v2270_v12  ;;  %v1795_v24 = vor.u32 %v2471_v14, %v1792_v15  ;;  %s1726_s30 = sshll.u32 %s2811_s29, 4  ;;  %s1727_s30 = int_to_ptr.vmem [resolvable:$true] %s1726_s30 }
  0x3a   :  { %1174 = vmatpush.bf16.msrb.mxu0 %v2211_v38  ;;  %1155 = vmatpush.bf16.msra.mxu2 %v1935_v47  ;;  %v1900_v19 = vld [vmem:[#allocation5 + $0x144] sm:$0xf0]  ;;  %v2876_v20 = vpack.c.bf16 %v112_v17, %v112_v17  ;;  %v2565_v25 = vld [vmem:[#allocation5 + $0x350] sm:$0xf0]  ;;  %v2468_v28 = vld [vmem:[#allocation5 + $0x4c] sm:$0xf] }
  0x3b   :  { %1187 = vmatpush.bf16.msrb.mxu1 %v2307_v39  ;;  %v2162_v23 = vld [vmem:[#allocation5 + $0x348] sm:$0xf]  ;;  %v2589_v27 = vld [vmem:[#allocation5 + $0x410] sm:$0xf0]  ;;  %v1780_v29 = vld [vmem:[#allocation5 + $0x54] sm:$0xf0]  ;;  %v1903_v30 = vor.u32 %v2498_v18, %v1900_v19 }
  0x3c   :  { %1213 = vmatpush.bf16.msrb.mxu3 %v1831_v43  ;;  %1143 = vmatmul.bf16.vlgmr.msra.gmra.mxu1 %v2871_v10  ;;  %v2258_v26 = vld [vmem:[#allocation5 + $0x408] sm:$0xf]  ;;  %v2495_v31 = vld [vmem:[#allocation5 + $0x124] sm:$0xf]  ;;  %v1888_v32 = vld [vmem:[#allocation5 + $0x12c] sm:$0xf0]  ;;  %v2163_v33 = vor.u32 %v2565_v25, %v2162_v23  ;;  %v1783_v38 = vor.u32 %v2468_v28, %v1780_v29 }
  0x3d   :  { %1156 = vmatmul.bf16.vlgmr.msra.gmra.mxu2 %v2867_v62  ;;  %1169 = vmatmul.bf16.vlgmr.msra.gmra.mxu3 %v2876_v20  ;;  %v2259_v34 = vor.u32 %v2589_v27, %v2258_v26  ;;  %v2150_v35 = vld [vmem:[#allocation5 + $0x330] sm:$0xf]  ;;  %v2562_v36 = vld [vmem:[#allocation5 + $0x338] sm:$0xf0]  ;;  %v2465_v41 = vld [vmem:[#allocation5 + $0x34] sm:$0xf]  ;;  %v1891_v43 = vor.u32 %v2495_v31, %v1888_v32 }
  0x3e   :  { %1207 = vmatpush.bf16.msrb.mxu2 %v2319_v50  ;;  %1175 = vmatpush.bf16.msrb.mxu0 %v2199_v54  ;;  %v103_v37 = vld [vmem:[#allocation2 + $0x8] sm:$0x3f]  ;;  %v2246_v39 = vld [vmem:[#allocation5 + $0x3f0] sm:$0xf]  ;;  %v1768_v42 = vld [vmem:[#allocation5 + $0x3c] sm:$0xf0]  ;;  %v2151_v46 = vor.u32 %v2562_v36, %v2150_v35 }
  0x3f   :  { %1188 = vmatpush.bf16.msrb.mxu1 %v2295_v55  ;;  %v2586_v40 = vld [vmem:[#allocation5 + $0x3f8] sm:$0xf0]  ;;  %108 = vst [vmem:[#allocation1 + $0x20] ss:$4 sm:$0xff] %v103_v37  ;;  %v2492_v44 = vld [vmem:[#allocation5 + $0x10c] sm:$0xf]  ;;  %v1771_v49 = vor.u32 %v2465_v41, %v1768_v42 }
  0x40   :  { %1214 = vmatpush.bf16.msrb.mxu3 %v1819_v59  ;;  %v1876_v45 = vld [vmem:[#allocation5 + $0x114] sm:$0xf0]  ;;  %v2247_v47 = vor.u32 %v2586_v40, %v2246_v39  ;;  %v2559_v50 = vld [vmem:[#allocation5 + $0x320] sm:$0xf0]  ;;  %v2462_v53 = vld [vmem:[#allocation5 + $0x1c] sm:$0xf] }
  0x41   :  { %v2138_v48 = vld [vmem:[#allocation5 + $0x318] sm:$0xf]  ;;  %v2583_v52 = vld [vmem:[#allocation5 + $0x3e0] sm:$0xf0]  ;;  %v1756_v54 = vld [vmem:[#allocation5 + $0x24] sm:$0xf0]  ;;  %v1879_v55 = vor.u32 %v2492_v44, %v1876_v45 }
  0x42   :  { %1226 = vmatpush.bf16.msra.mxu2 %v1927_v1  ;;  %1176 = vmatpush.bf16.msrb.mxu0 %v2187_v6  ;;  %v2234_v51 = vld [vmem:[#allocation5 + $0x3d8] sm:$0xf]  ;;  %v2126_v56 = vld [vmem:[#allocation5 + $0x300] sm:$0xf]  ;;  %v2556_v57 = vld [vmem:[#allocation5 + $0x308] sm:$0xf0]  ;;  %v2139_v61 = vor.u32 %v2559_v50, %v2138_v48  ;;  %v1759_v2 = vor.u32 %v2462_v53, %v1756_v54 }
  0x43   :  { %1189 = vmatpush.bf16.msrb.mxu1 %v2283_v7  ;;  %v2222_v58 = vld [vmem:[#allocation5 + $0x3c0] sm:$0xf]  ;;  %v2489_v59 = vld [vmem:[#allocation5 + $0xf4] sm:$0xf]  ;;  %v2235_v63 = vor.u32 %v2583_v52, %v2234_v51  ;;  %v2580_v0 = vld [vmem:[#allocation5 + $0x3c8] sm:$0xf0] }
  0x44   :  { %1215 = vmatpush.bf16.msrb.mxu3 %v1807_v11  ;;  %v1864_v60 = vld [vmem:[#allocation5 + $0xfc] sm:$0xf0]  ;;  %v2459_v4 = vld [vmem:[#allocation5 + $0x4] sm:$0xf]  ;;  %v1744_v5 = vld [vmem:[#allocation5 + $0xc] sm:$0xf0]  ;;  %v2223_v17 = vor.u32 %v2580_v0, %v2222_v58 }
  0x45   :  { %v2528_v7 = vld [vmem:[#allocation5 + $0x22c] sm:$0xf]  ;;  %v1867_v8 = vor.u32 %v2489_v59, %v1864_v60  ;;  %v2020_v9 = vld [vmem:[#allocation5 + $0x234] sm:$0xf0]  ;;  %v2486_v15 = vld [vmem:[#allocation5 + $0xdc] sm:$0xf] }
  0x46   :  { %1227 = vmatpush.bf16.msra.mxu2 %v1915_v16  ;;  %1177 = vmatpush.bf16.msrb.mxu0 %v2175_v21  ;;  %v115_v1 = vld.sshfl [vmem:[#allocation1 + $0x30] sm:$0xff pattern:$0x73625140]  ;;  %v2552_v11 = vld [vmem:[#allocation5 + $0x2ec] sm:$0xf]  ;;  %v2127_v16 = vor.u32 %v2556_v57, %v2126_v56  ;;  %v1747_v21 = vor.u32 %v2459_v4, %v1744_v5  ;;  %s1728_s10 = sshll.u32 %s2926_s7, 4  ;;  %s1729_s10 = int_to_ptr.hbm [resolvable:$true] %s1728_s10 }
  0x47   :  { %1190 = vmatpush.bf16.msrb.mxu1 %v2271_v22  ;;  %v2879_v6 = vpack.c.bf16 %v115_v1, %v115_v1  ;;  %v2116_v12 = vld [vmem:[#allocation5 + $0x2f4] sm:$0xf0]  ;;  %v2576_v13 = vld [vmem:[#allocation5 + $0x3ac] sm:$0xf]  ;;  %v1852_v19 = vld [vmem:[#allocation5 + $0xe4] sm:$0xf0]  ;;  %v2023_v22 = vor.u32 %v2528_v7, %v2020_v9 }
  0x48   :  { %1216 = vmatpush.bf16.msrb.mxu3 %v1795_v24  ;;  %v2212_v14 = vld [vmem:[#allocation5 + $0x3b4] sm:$0xf0]  ;;  %v113_v18 = vld.sshfl [vmem:[#allocation1 + $0x20] sm:$0xff pattern:$0x73625140]  ;;  %v2119_v24 = vor.u32 %v2552_v11, %v2116_v12 }
  0x49   :  { %v114_v23 = vld.sshfl [vmem:[#allocation1 + $0x28] sm:$0xff pattern:$0x73625140]  ;;  %v2215_v25 = vor.u32 %v2576_v13, %v2212_v14  ;;  %v2008_v27 = vld [vmem:[#allocation5 + $0x21c] sm:$0xf0]  ;;  %v2883_v29 = vpack.c.bf16 %v113_v18, %v113_v18 }
  0x4a   :  { %1228 = vmatpush.bf16.msra.mxu2 %v1903_v30  ;;  %1178 = vmatpush.bf16.msrb.mxu0 %v2163_v33  ;;  %v2525_v26 = vld [vmem:[#allocation5 + $0x214] sm:$0xf]  ;;  %v1855_v30 = vor.u32 %v2486_v15, %v1852_v19  ;;  %v2104_v31 = vld [vmem:[#allocation5 + $0x2dc] sm:$0xf0]  ;;  %v2483_v35 = vld [vmem:[#allocation5 + $0xc4] sm:$0xf] }
  0x4b   :  { %1191 = vmatpush.bf16.msrb.mxu1 %v2259_v34  ;;  %v2549_v28 = vld [vmem:[#allocation5 + $0x2d4] sm:$0xf]  ;;  %v2200_v33 = vld [vmem:[#allocation5 + $0x39c] sm:$0xf0]  ;;  %v2885_v34 = vpack.c.bf16 %v114_v23, %v114_v23  ;;  %v1840_v36 = vld [vmem:[#allocation5 + $0xcc] sm:$0xf0]  ;;  %v2011_v37 = vor.u32 %v2525_v26, %v2008_v27 }
  0x4c   :  { %1217 = vmatpush.bf16.msrb.mxu3 %v1783_v38  ;;  %v2573_v32 = vld [vmem:[#allocation5 + $0x394] sm:$0xf]  ;;  %v2600_v38 = vld [vmem:[#allocation5 + $0x46c] sm:$0xf]  ;;  %v2308_v39 = vld [vmem:[#allocation5 + $0x474] sm:$0xf0]  ;;  %v2107_v40 = vor.u32 %v2549_v28, %v2104_v31  ;;  %v1843_v45 = vor.u32 %v2483_v35, %v1840_v36 }
  0x4d   :  { %2328 = vmatmul.msk.bf16.vlgmr.msrb.gmra.mxu2 %vm1118_vm0, %v2879_v6  ;;  %v2203_v41 = vor.u32 %v2573_v32, %v2200_v33  ;;  %v2522_v42 = vld [vmem:[#allocation5 + $0x1fc] sm:$0xf]  ;;  %v2188_v48 = vld [vmem:[#allocation5 + $0x384] sm:$0xf0]  ;;  %v2597_v51 = vld [vmem:[#allocation5 + $0x454] sm:$0xf] }
  0x4e   :  { %1229 = vmatpush.bf16.msra.mxu2 %v1891_v43  ;;  %1179 = vmatpush.bf16.msrb.mxu0 %v2151_v46  ;;  %v1996_v43 = vld [vmem:[#allocation5 + $0x204] sm:$0xf0]  ;;  %v2546_v44 = vld [vmem:[#allocation5 + $0x2bc] sm:$0xf]  ;;  %v2296_v52 = vld [vmem:[#allocation5 + $0x45c] sm:$0xf0] }
  0x4f   :  { %1192 = vmatpush.bf16.msrb.mxu1 %v2247_v47  ;;  %v2092_v46 = vld [vmem:[#allocation5 + $0x2c4] sm:$0xf0]  ;;  %v2570_v47 = vld [vmem:[#allocation5 + $0x37c] sm:$0xf]  ;;  %v1999_v50 = vor.u32 %v2522_v42, %v1996_v43  ;;  %v1984_v56 = vld [vmem:[#allocation5 + $0x1ec] sm:$0xf0] }
  0x50   :  { %1218 = vmatpush.bf16.msrb.mxu3 %v1771_v49  ;;  %v2311_v49 = vor.u32 %v2600_v38, %v2308_v39  ;;  %v2095_v53 = vor.u32 %v2546_v44, %v2092_v46  ;;  %v2191_v54 = vor.u32 %v2570_v47, %v2188_v48  ;;  %v2543_v57 = vld [vmem:[#allocation5 + $0x2a4] sm:$0xf]  ;;  %v2080_v58 = vld [vmem:[#allocation5 + $0x2ac] sm:$0xf0]  ;;  %v2594_v0 = vld [vmem:[#allocation5 + $0x43c] sm:$0xf] }
  0x51   :  { %v2567_v59 = vld [vmem:[#allocation5 + $0x364] sm:$0xf]  ;;  %v2176_v60 = vld [vmem:[#allocation5 + $0x36c] sm:$0xf0]  ;;  %v2284_v1 = vld [vmem:[#allocation5 + $0x444] sm:$0xf0] }
  0x52   :  { %1230 = vmatpush.bf16.msra.mxu2 %v1879_v55  ;;  %1180 = vmatpush.bf16.msrb.mxu0 %v2139_v61  ;;  %v2519_v55 = vld [vmem:[#allocation5 + $0x1e4] sm:$0xf]  ;;  %v2299_v61 = vor.u32 %v2597_v51, %v2296_v52  ;;  %v2179_v4 = vor.u32 %v2567_v59, %v2176_v60  ;;  %v2516_v5 = vld [vmem:[#allocation5 + $0x1cc] sm:$0xf]  ;;  %v1972_v7 = vld [vmem:[#allocation5 + $0x1d4] sm:$0xf0]  ;;  %v2287_v13 = vor.u32 %v2594_v0, %v2284_v1 }
  0x53   :  { %1193 = vmatpush.bf16.msrb.mxu1 %v2235_v63  ;;  %v1987_v63 = vor.u32 %v2519_v55, %v1984_v56  ;;  %v2068_v9 = vld [vmem:[#allocation5 + $0x294] sm:$0xf0]  ;;  %v2564_v11 = vld [vmem:[#allocation5 + $0x34c] sm:$0xf]  ;;  %v1975_v14 = vor.u32 %v2516_v5, %v1972_v7  ;;  %v2591_v15 = vld [vmem:[#allocation5 + $0x424] sm:$0xf] }
  0x54   :  { %1219 = vmatpush.bf16.msrb.mxu3 %v1759_v2  ;;  %v2083_v2 = vor.u32 %v2543_v57, %v2080_v58  ;;  %v2164_v12 = vld [vmem:[#allocation5 + $0x354] sm:$0xf0]  ;;  %v2513_v19 = vld [vmem:[#allocation5 + $0x1b4] sm:$0xf]  ;;  %v2056_v23 = vld [vmem:[#allocation5 + $0x27c] sm:$0xf0] }
  0x55   :  { %v2167_v18 = vor.u32 %v2564_v11, %v2164_v12  ;;  %v2588_v28 = vld [vmem:[#allocation5 + $0x40c] sm:$0xf]  ;;  %v2510_v33 = vld [vmem:[#allocation5 + $0x19c] sm:$0xf]  ;;  %v1948_v35 = vld [vmem:[#allocation5 + $0x1a4] sm:$0xf0] }
  0x56   :  { %1231 = vmatpush.bf16.msra.mxu2 %v1867_v8  ;;  %1181 = vmatpush.bf16.msrb.mxu0 %v2127_v16  ;;  %v2540_v8 = vld [vmem:[#allocation5 + $0x28c] sm:$0xf]  ;;  %v2272_v16 = vld [vmem:[#allocation5 + $0x42c] sm:$0xf0]  ;;  %v2534_v36 = vld [vmem:[#allocation5 + $0x25c] sm:$0xf] }
  0x57   :  { %1194 = vmatpush.bf16.msrb.mxu1 %v2223_v17  ;;  %v2071_v17 = vor.u32 %v2540_v8, %v2068_v9  ;;  %v2275_v26 = vor.u32 %v2591_v15, %v2272_v16  ;;  %v2558_v38 = vld [vmem:[#allocation5 + $0x31c] sm:$0xf]  ;;  %v2140_v39 = vld [vmem:[#allocation5 + $0x324] sm:$0xf0]  ;;  %v2507_v42 = vld [vmem:[#allocation5 + $0x184] sm:$0xf] }
  0x58   :  { %1220 = vmatpush.bf16.msrb.mxu3 %v1747_v21  ;;  %v1960_v21 = vld [vmem:[#allocation5 + $0x1bc] sm:$0xf0]  ;;  %v2585_v43 = vld [vmem:[#allocation5 + $0x3f4] sm:$0xf]  ;;  %v2143_v46 = vor.u32 %v2558_v38, %v2140_v39  ;;  %v1936_v47 = vld [vmem:[#allocation5 + $0x18c] sm:$0xf0] }
  0x59   :  { %1182 = vmatmul.bf16.vlgmr.msrb.gmra.mxu0 %v2883_v29  ;;  %v1963_v27 = vor.u32 %v2513_v19, %v1960_v21  ;;  %v2248_v44 = vld [vmem:[#allocation5 + $0x3fc] sm:$0xf0]  ;;  %v2531_v48 = vld [vmem:[#allocation5 + $0x244] sm:$0xf]  ;;  %v2128_v51 = vld [vmem:[#allocation5 + $0x30c] sm:$0xf0]  ;;  %v1939_v57 = vor.u32 %v2507_v42, %v1936_v47 }
  0x5a   :  { %1239 = vmatpush.bf16.msra.mxu0 %v2023_v22  ;;  %1232 = vmatpush.bf16.msra.mxu2 %v1855_v30  ;;  %v2537_v22 = vld [vmem:[#allocation5 + $0x274] sm:$0xf]  ;;  %v2260_v30 = vld [vmem:[#allocation5 + $0x414] sm:$0xf0]  ;;  %v1834_v52 = vld [vmem:[#allocation5 + $0xb0] sm:$0xf] }
  0x5b   :  { %1252 = vmatpush.bf16.msra.mxu1 %v2119_v24  ;;  %1221 = vmatmul.bf16.vlgmr.msrb.gmra.mxu3 %v2869_v3  ;;  %v2561_v24 = vld [vmem:[#allocation5 + $0x334] sm:$0xf]  ;;  %v2059_v31 = vor.u32 %v2537_v22, %v2056_v23  ;;  %v1930_v55 = vld [vmem:[#allocation5 + $0x170] sm:$0xf]  ;;  %v2506_v56 = vld [vmem:[#allocation5 + $0x178] sm:$0xf0] }
  0x5c   :  { %1265 = vmatpush.bf16.msra.mxu3 %v2215_v25  ;;  %1195 = vmatmul.bf16.vlgmr.msrb.gmra.mxu1 %v2885_v34  ;;  %v2152_v25 = vld [vmem:[#allocation5 + $0x33c] sm:$0xf0]  ;;  %v2582_v58 = vld [vmem:[#allocation5 + $0x3dc] sm:$0xf]  ;;  %v2236_v59 = vld [vmem:[#allocation5 + $0x3e4] sm:$0xf0] }
  0x5d   :  { %v2155_v32 = vor.u32 %v2561_v24, %v2152_v25  ;;  %v2479_v0 = vld [vmem:[#allocation5 + $0xa0] sm:$0xf0]  ;;  %v2320_v5 = vld [vmem:[#allocation5 + $0x48c] sm:$0xf0]  ;;  %v2239_v7 = vor.u32 %v2582_v58, %v2236_v59  ;;  %v1918_v8 = vld [vmem:[#allocation5 + $0x158] sm:$0xf] }
  0x5e   :  { %1240 = vmatpush.bf16.msra.mxu0 %v2011_v37  ;;  %1233 = vmatpush.bf16.msra.mxu2 %v1843_v45  ;;  %v2044_v37 = vld [vmem:[#allocation5 + $0x264] sm:$0xf0]  ;;  %v2503_v9 = vld [vmem:[#allocation5 + $0x160] sm:$0xf0]  ;;  %v2224_v12 = vld [vmem:[#allocation5 + $0x3cc] sm:$0xf0] }
  0x5f   :  { %1253 = vmatpush.bf16.msra.mxu1 %v2107_v40  ;;  %v2263_v40 = vor.u32 %v2588_v28, %v2260_v30  ;;  %v2047_v45 = vor.u32 %v2534_v36, %v2044_v37  ;;  %v2579_v11 = vld [vmem:[#allocation5 + $0x3c4] sm:$0xf]  ;;  %v2122_v16 = vld [vmem:[#allocation5 + $0x2f0] sm:$0xf]  ;;  %v1919_v19 = vor.u32 %v2503_v9, %v1918_v8  ;;  %v1810_v21 = vld [vmem:[#allocation5 + $0x80] sm:$0xf] }
  0x60   :  { %1266 = vmatpush.bf16.msra.mxu3 %v2203_v41  ;;  %v1951_v41 = vor.u32 %v2510_v33, %v1948_v35  ;;  %v2227_v22 = vor.u32 %v2579_v11, %v2224_v12  ;;  %v2476_v23 = vld [vmem:[#allocation5 + $0x88] sm:$0xf0]  ;;  %v1906_v24 = vld [vmem:[#allocation5 + $0x140] sm:$0xf]  ;;  %v2527_v28 = vld [vmem:[#allocation5 + $0x220] sm:$0xf0] }
  0x61   :  { %1234 = vmatmul.bf16.vlgmr.msra.gmra.mxu2 %v2871_v10  ;;  %v2500_v25 = vld [vmem:[#allocation5 + $0x148] sm:$0xf0]  ;;  %v1811_v33 = vor.u32 %v2476_v23, %v1810_v21  ;;  %v1798_v36 = vld [vmem:[#allocation5 + $0x68] sm:$0xf]  ;;  %v2473_v37 = vld [vmem:[#allocation5 + $0x70] sm:$0xf0] }
  0x62   :  { %1278 = vmatpush.bf16.msrb.mxu2 %v2311_v49  ;;  %1241 = vmatpush.bf16.msra.mxu0 %v1999_v50  ;;  %v2032_v49 = vld [vmem:[#allocation5 + $0x24c] sm:$0xf0]  ;;  %v2555_v50 = vld [vmem:[#allocation5 + $0x304] sm:$0xf]  ;;  %v1907_v35 = vor.u32 %v2500_v25, %v1906_v24  ;;  %v1894_v38 = vld [vmem:[#allocation5 + $0x128] sm:$0xf] }
  0x63   :  { %1254 = vmatpush.bf16.msra.mxu1 %v2095_v53  ;;  %v2251_v53 = vor.u32 %v2585_v43, %v2248_v44  ;;  %v2035_v60 = vor.u32 %v2531_v48, %v2032_v49  ;;  %v2497_v39 = vld [vmem:[#allocation5 + $0x130] sm:$0xf0]  ;;  %v2524_v42 = vld [vmem:[#allocation5 + $0x208] sm:$0xf0]  ;;  %v2098_v44 = vld [vmem:[#allocation5 + $0x2c0] sm:$0xf] }
  0x64   :  { %1267 = vmatpush.bf16.msra.mxu3 %v2191_v54  ;;  %v2482_v54 = vld [vmem:[#allocation5 + $0xb8] sm:$0xf0]  ;;  %v1895_v47 = vor.u32 %v2497_v39, %v1894_v38  ;;  %v1786_v48 = vld [vmem:[#allocation5 + $0x50] sm:$0xf]  ;;  %v1762_v12 = vld [vmem:[#allocation5 + $0x20] sm:$0xf] }
  0x65   :  { %v1835_v1 = vor.u32 %v2482_v54, %v1834_v52  ;;  %v2470_v49 = vld [vmem:[#allocation5 + $0x58] sm:$0xf0]  ;;  %v2062_v21 = vld [vmem:[#allocation5 + $0x278] sm:$0xf]  ;;  %v1750_v25 = vld [vmem:[#allocation5 + $0x8] sm:$0xf] }
  0x66   :  { %1279 = vmatpush.bf16.msrb.mxu2 %v2299_v61  ;;  %1242 = vmatpush.bf16.msra.mxu0 %v1987_v63  ;;  %v2131_v61 = vor.u32 %v2555_v50, %v2128_v51  ;;  %v1822_v63 = vld [vmem:[#allocation5 + $0x98] sm:$0xf]  ;;  %v1882_v50 = vld [vmem:[#allocation5 + $0x110] sm:$0xf]  ;;  %v2494_v51 = vld [vmem:[#allocation5 + $0x118] sm:$0xf0]  ;;  %v1787_v58 = vor.u32 %v2470_v49, %v1786_v48 }
  0x67   :  { %1255 = vmatpush.bf16.msra.mxu1 %v2083_v2  ;;  %v1931_v2 = vor.u32 %v2506_v56, %v1930_v55  ;;  %v2521_v55 = vld [vmem:[#allocation5 + $0x1f0] sm:$0xf0]  ;;  %v2086_v56 = vld [vmem:[#allocation5 + $0x2a8] sm:$0xf]  ;;  %v1883_v59 = vor.u32 %v2494_v51, %v1882_v50  ;;  %v2542_v8 = vld [vmem:[#allocation5 + $0x298] sm:$0xf0] }
  0x68   :  { %1268 = vmatpush.bf16.msra.mxu3 %v2179_v4  ;;  %v2603_v4 = vld [vmem:[#allocation5 + $0x484] sm:$0xf]  ;;  %v2512_v38 = vld [vmem:[#allocation5 + $0x1a8] sm:$0xf0]  ;;  %v2050_v39 = vld [vmem:[#allocation5 + $0x260] sm:$0xf] }
  0x69   :  { %v2323_v15 = vor.u32 %v2603_v4, %v2320_v5  ;;  %v2518_v5 = vld [vmem:[#allocation5 + $0x1d8] sm:$0xf0]  ;;  %v2599_v48 = vld [vmem:[#allocation5 + $0x460] sm:$0xf0]  ;;  %v1942_v50 = vld [vmem:[#allocation5 + $0x188] sm:$0xf] }
  0x6a   :  { %1280 = vmatpush.bf16.msrb.mxu2 %v2287_v13  ;;  %1243 = vmatpush.bf16.msra.mxu0 %v1975_v14  ;;  %v2026_v13 = vld [vmem:[#allocation5 + $0x230] sm:$0xf]  ;;  %v2530_v14 = vld [vmem:[#allocation5 + $0x238] sm:$0xf0] }
  0x6b   :  { %1256 = vmatpush.bf16.msra.mxu1 %v2071_v17  ;;  %v2554_v17 = vld [vmem:[#allocation5 + $0x2f8] sm:$0xf0] }
  0x6c   :  { %1269 = vmatpush.bf16.msra.mxu3 %v2167_v18  ;;  %v1823_v18 = vor.u32 %v2479_v0, %v1822_v63  ;;  %v2123_v30 = vor.u32 %v2554_v17, %v2122_v16  ;;  %v1870_v63 = vld [vmem:[#allocation5 + $0xf8] sm:$0xf]  ;;  %v2491_v0 = vld [vmem:[#allocation5 + $0x100] sm:$0xf0] }
  0x6d   :  { %v1871_v11 = vor.u32 %v2491_v0, %v1870_v63  ;;  %v1966_v17 = vld [vmem:[#allocation5 + $0x1b8] sm:$0xf]  ;;  %v2596_v63 = vld [vmem:[#allocation5 + $0x448] sm:$0xf0] }
  0x6e   :  { %1281 = vmatpush.bf16.msrb.mxu2 %v2275_v26  ;;  %1244 = vmatpush.bf16.msra.mxu0 %v1963_v27  ;;  %v2027_v26 = vor.u32 %v2530_v14, %v2026_v13  ;;  %v2014_v27 = vld [vmem:[#allocation5 + $0x218] sm:$0xf]  ;;  %v2464_v13 = vld [vmem:[#allocation5 + $0x28] sm:$0xf0]  ;;  %v1858_v14 = vld [vmem:[#allocation5 + $0xe0] sm:$0xf] }
  0x6f   :  { %1257 = vmatpush.bf16.msra.mxu1 %v2059_v31  ;;  %v2110_v31 = vld [vmem:[#allocation5 + $0x2d8] sm:$0xf]  ;;  %v1763_v23 = vor.u32 %v2464_v13, %v1762_v12  ;;  %v2593_v12 = vld [vmem:[#allocation5 + $0x430] sm:$0xf0] }
  0x70   :  { %1270 = vmatpush.bf16.msra.mxu3 %v2155_v32  ;;  %v2551_v32 = vld [vmem:[#allocation5 + $0x2e0] sm:$0xf0] }
  0x71   :  { %v2111_v43 = vor.u32 %v2551_v32, %v2110_v31  ;;  %v2578_v31 = vld [vmem:[#allocation5 + $0x3b8] sm:$0xf0]  ;;  %v2314_v32 = vld [vmem:[#allocation5 + $0x470] sm:$0xf] }
  0x72   :  { %1282 = vmatpush.bf16.msrb.mxu2 %v2263_v40  ;;  %1245 = vmatpush.bf16.msra.mxu0 %v1951_v41  ;;  %v2015_v40 = vor.u32 %v2527_v28, %v2014_v27  ;;  %v2002_v41 = vld [vmem:[#allocation5 + $0x200] sm:$0xf]  ;;  %v1846_v27 = vld [vmem:[#allocation5 + $0xc8] sm:$0xf]  ;;  %v2485_v28 = vld [vmem:[#allocation5 + $0xd0] sm:$0xf0] }
  0x73   :  { %1258 = vmatpush.bf16.msra.mxu1 %v2047_v45  ;;  %v2548_v45 = vld [vmem:[#allocation5 + $0x2c8] sm:$0xf0]  ;;  %v2003_v52 = vor.u32 %v2524_v42, %v2002_v41  ;;  %v1847_v42 = vor.u32 %v2485_v28, %v1846_v27  ;;  %v2242_v28 = vld [vmem:[#allocation5 + $0x3e0] sm:$0xf] }
  0x74   :  { %1271 = vmatpush.bf16.msra.mxu3 %v2143_v46  ;;  %v1799_v46 = vor.u32 %v2473_v37, %v1798_v36  ;;  %v2099_v54 = vor.u32 %v2548_v45, %v2098_v44  ;;  %v1954_v36 = vld [vmem:[#allocation5 + $0x1a0] sm:$0xf]  ;;  %v2206_v45 = vld [vmem:[#allocation5 + $0x398] sm:$0xf]  ;;  %v2560_v27 = vld [vmem:[#allocation5 + $0x328] sm:$0xf0] }
  0x75   :  { %v1955_v49 = vor.u32 %v2512_v38, %v1954_v36  ;;  %v2557_v36 = vld [vmem:[#allocation5 + $0x310] sm:$0xf0] }
  0x76   :  { %1283 = vmatpush.bf16.msrb.mxu2 %v2251_v53  ;;  %1246 = vmatpush.bf16.msra.mxu0 %v1939_v57  ;;  %v1990_v53 = vld [vmem:[#allocation5 + $0x1e8] sm:$0xf]  ;;  %v2545_v57 = vld [vmem:[#allocation5 + $0x2b0] sm:$0xf0] }
  0x77   :  { %1259 = vmatpush.bf16.msra.mxu1 %v2035_v60  ;;  %v1774_v60 = vld [vmem:[#allocation5 + $0x38] sm:$0xf]  ;;  %v2087_v4 = vor.u32 %v2545_v57, %v2086_v56  ;;  %v2605_v56 = vld [vmem:[#allocation5 + $0x490] sm:$0xf0] }
  0x78   :  { %1272 = vmatpush.bf16.msra.mxu3 %v2131_v61  ;;  %v2467_v61 = vld [vmem:[#allocation5 + $0x40] sm:$0xf0]  ;;  %v2581_v38 = vld [vmem:[#allocation5 + $0x3d0] sm:$0xf0] }
  0x79   :  { %1247 = vmatmul.bf16.vlgmr.msra.gmra.mxu0 %v2867_v62  ;;  %v1775_v9 = vor.u32 %v2467_v61, %v1774_v60  ;;  %v2572_v60 = vld [vmem:[#allocation5 + $0x388] sm:$0xf0]  ;;  %v2290_v61 = vld [vmem:[#allocation5 + $0x440] sm:$0xf] }
  0x7a   :  { %1284 = vmatpush.bf16.msrb.mxu2 %v2239_v7  ;;  %1260 = vmatmul.bf16.vlgmr.msra.gmra.mxu1 %v2876_v20  ;;  %v2074_v7 = vld [vmem:[#allocation5 + $0x290] sm:$0xf] }
  0x7b   :  { %1304 = vmatpush.bf16.msrb.mxu1 %v1835_v1  ;;  %1273 = vmatmul.bf16.vlgmr.msra.gmra.mxu3 %v2883_v29  ;;  %v1991_v1 = vor.u32 %v2521_v55, %v1990_v53  ;;  %v2038_v53 = vld [vmem:[#allocation5 + $0x248] sm:$0xf] }
  0x7c   :  { %1317 = vmatpush.bf16.msrb.mxu3 %v1931_v2  ;;  %1298 = vmatpush.bf16.msrb.mxu0 %v2323_v15  ;;  %v1978_v2 = vld [vmem:[#allocation5 + $0x1d0] sm:$0xf]  ;;  %v2488_v15 = vld [vmem:[#allocation5 + $0xe8] sm:$0xf0]  ;;  %v2326_v55 = vld [vmem:[#allocation5 + $0x488] sm:$0xf] }
  0x7d   :  { %v1979_v16 = vor.u32 %v2518_v5, %v1978_v2  ;;  %v1859_v24 = vor.u32 %v2488_v15, %v1858_v14  ;;  %v2327_v2 = vor.u32 %v2605_v56, %v2326_v55  ;;  %v2170_v14 = vld [vmem:[#allocation5 + $0x350] sm:$0xf] }
  0x7e   :  { %1285 = vmatpush.bf16.msrb.mxu2 %v2227_v22  ;;  %v2539_v22 = vld [vmem:[#allocation5 + $0x280] sm:$0xf0]  ;;  %v2266_v15 = vld [vmem:[#allocation5 + $0x410] sm:$0xf] }
  0x7f   :  { %1305 = vmatpush.bf16.msrb.mxu1 %v1823_v18  ;;  %v2075_v18 = vor.u32 %v2542_v8, %v2074_v7  ;;  %v2063_v37 = vor.u32 %v2539_v22, %v2062_v21  ;;  %v2291_v7 = vor.u32 %v2596_v63, %v2290_v61  ;;  %v2182_v8 = vld [vmem:[#allocation5 + $0x368] sm:$0xf]  ;;  %v2612_v21 = vld [vmem:[#allocation8 + $0x30] sm:$0xff]  ;;  %v2563_v22 = vld [vmem:[#allocation5 + $0x340] sm:$0xf0] }
  0x80   :  { %1318 = vmatpush.bf16.msrb.mxu3 %v1919_v19  ;;  %1330 = vmatpush.bf16.msra.mxu0 %v2027_v26  ;;  %v2515_v19 = vld [vmem:[#allocation5 + $0x1c0] sm:$0xf0]  ;;  %v2461_v26 = vld [vmem:[#allocation5 + $0x10] sm:$0xf0] }
  0x81   :  { %1286 = vmatmul.bf16.vlgmr.msrb.gmra.mxu2 %v2885_v34  ;;  %v1751_v41 = vor.u32 %v2461_v26, %v1750_v25 }
  0x82   :  { %1343 = vmatpush.bf16.msra.mxu2 %v2123_v30  ;;  %v2218_v30 = vld [vmem:[#allocation5 + $0x3b0] sm:$0xf] }
  0x83   :  { %1306 = vmatpush.bf16.msrb.mxu1 %v1811_v33  ;;  %v2602_v33 = vld [vmem:[#allocation5 + $0x478] sm:$0xf0] }
  0x84   :  { %1319 = vmatpush.bf16.msrb.mxu3 %v1907_v35  ;;  %1331 = vmatpush.bf16.msra.mxu0 %v2015_v40  ;;  %v1967_v35 = vor.u32 %v2515_v19, %v1966_v17  ;;  %v2536_v40 = vld [vmem:[#allocation5 + $0x268] sm:$0xf0]  ;;  %v2315_v44 = vor.u32 %v2602_v33, %v2314_v32  ;;  %v2158_v19 = vld [vmem:[#allocation5 + $0x338] sm:$0xf] }
  0x85   :  { %v2051_v51 = vor.u32 %v2536_v40, %v2050_v39  ;;  %v2159_v25 = vor.u32 %v2563_v22, %v2158_v19 }
  0x86   :  { %1344 = vmatpush.bf16.msra.mxu2 %v2111_v43  ;;  %v2219_v43 = vor.u32 %v2578_v31, %v2218_v30  ;;  %v2584_v30 = vld [vmem:[#allocation5 + $0x3e8] sm:$0xf0]  ;;  %v2611_v31 = vld [vmem:[#allocation8 + $0x28] sm:$0xff] }
  0x87   :  { %1307 = vmatpush.bf16.msrb.mxu1 %v1799_v46  ;;  %v2575_v46 = vld [vmem:[#allocation5 + $0x3a0] sm:$0xf0]  ;;  %v2243_v33 = vor.u32 %v2584_v30, %v2242_v28  ;;  %v2628_v28 = vld [vmem:[#allocation8 + $0xb0] sm:$0xff] }
  0x88   :  { %1320 = vmatpush.bf16.msrb.mxu3 %v1895_v47  ;;  %1332 = vmatpush.bf16.msra.mxu0 %v2003_v52  ;;  %v2302_v47 = vld [vmem:[#allocation5 + $0x458] sm:$0xf]  ;;  %v2509_v52 = vld [vmem:[#allocation5 + $0x190] sm:$0xf0]  ;;  %v2207_v57 = vor.u32 %v2575_v46, %v2206_v45  ;;  %v2606_v45 = vld [vmem:[#allocation8] sm:$0xff] }
  0x89   :  { %2329 = vmatmul.msk.bf16.vlgmr.msrb.gmra.mxu0 %vm1118_vm0, %v2879_v6  ;;  %v1943_v0 = vor.u32 %v2509_v52, %v1942_v50  ;;  %v2620_v50 = vld [vmem:[#allocation8 + $0x70] sm:$0xff] }
  0x8a   :  { %1345 = vmatpush.bf16.msra.mxu2 %v2099_v54  ;;  %v2533_v54 = vld [vmem:[#allocation5 + $0x250] sm:$0xf0] }
  0x8b   :  { %1308 = vmatpush.bf16.msrb.mxu1 %v1787_v58  ;;  %v2303_v58 = vor.u32 %v2599_v48, %v2302_v47  ;;  %v2905_v47 = vld [vmem:[#allocation7] sm:$0x7] }
  0x8c   :  { %1321 = vmatpush.bf16.msrb.mxu3 %v1883_v59  ;;  %1333 = vmatpush.bf16.msra.mxu0 %v1991_v1  ;;  %v2194_v59 = vld [vmem:[#allocation5 + $0x380] sm:$0xf]  ;;  %v2039_v1 = vor.u32 %v2533_v54, %v2038_v53  ;;  %v2621_v48 = vld [vmem:[#allocation8 + $0x78] sm:$0xff] }
  0x8d   :  { %v2195_v5 = vor.u32 %v2572_v60, %v2194_v59  ;;  %v2618_v60 = vld [vmem:[#allocation8 + $0x60] sm:$0xff] }
  0x8e   :  { %1346 = vmatpush.bf16.msra.mxu2 %v2087_v4  ;;  %v2613_v4 = vld [vmem:[#allocation8 + $0x38] sm:$0xff] }
  0x8f   :  { %1309 = vmatpush.bf16.msrb.mxu1 %v1775_v9  ;;  %v2569_v9 = vld [vmem:[#allocation5 + $0x370] sm:$0xf0] }
  0x90   :  { %1322 = vmatpush.bf16.msrb.mxu3 %v1871_v11  ;;  %1334 = vmatpush.bf16.msra.mxu0 %v1979_v16  ;;  %v2278_v11 = vld [vmem:[#allocation5 + $0x428] sm:$0xf]  ;;  %v2183_v13 = vor.u32 %v2569_v9, %v2182_v8  ;;  %v2590_v16 = vld [vmem:[#allocation5 + $0x418] sm:$0xf0] }
  0x92   :  { %1347 = vmatpush.bf16.msra.mxu2 %v2075_v18  ;;  %v2267_v18 = vor.u32 %v2590_v16, %v2266_v15  ;;  %v2614_v15 = vld [vmem:[#allocation8 + $0x40] sm:$0xff]  ;;  %v329_v16 = vperm.slane %v2905_v47, 1 }
  0x93   :  { %1310 = vmatpush.bf16.msrb.mxu1 %v1763_v23  ;;  %v2254_v23 = vld [vmem:[#allocation5 + $0x3f8] sm:$0xf] }
  0x94   :  { %1323 = vmatpush.bf16.msrb.mxu3 %v1859_v24  ;;  %1335 = vmatpush.bf16.msra.mxu0 %v1967_v35  ;;  %v2587_v24 = vld [vmem:[#allocation5 + $0x400] sm:$0xf0]  ;;  %v2134_v35 = vld [vmem:[#allocation5 + $0x308] sm:$0xf] }
  0x95   :  { %v2255_v26 = vor.u32 %v2587_v24, %v2254_v23  ;;  %v2135_v39 = vor.u32 %v2557_v36, %v2134_v35 }
  0x96   :  { %1348 = vmatpush.bf16.msra.mxu2 %v2063_v37  ;;  %v2230_v37 = vld [vmem:[#allocation5 + $0x3c8] sm:$0xf] }
  0x97   :  { %1311 = vmatpush.bf16.msrb.mxu1 %v1751_v41  ;;  %v2231_v40 = vor.u32 %v2581_v38, %v2230_v37  ;;  %v2609_v41 = vld [vmem:[#allocation8 + $0x18] sm:$0xff]  ;;  %v2626_v37 = vld [vmem:[#allocation8 + $0xa0] sm:$0xff] }
  0x98   :  { %1324 = vmatpush.bf16.msrb.mxu3 %v1847_v42  ;;  %1336 = vmatpush.bf16.msra.mxu0 %v1955_v49  ;;  %v2608_v42 = vld [vmem:[#allocation8 + $0x10] sm:$0xff] }
  0x9a   :  { %1349 = vmatpush.bf16.msra.mxu2 %v2051_v51  ;;  %1312 = vmatmul.bf16.vlgmr.msrb.gmra.mxu1 %v2869_v3  ;;  %v2566_v3 = vld [vmem:[#allocation5 + $0x358] sm:$0xf0] }
  0x9b   :  { %1356 = vmatpush.bf16.msra.mxu1 %v2219_v43  ;;  %1325 = vmatmul.bf16.vlgmr.msrb.gmra.mxu3 %v2871_v10  ;;  %v2279_v10 = vor.u32 %v2593_v12, %v2278_v11  ;;  %v2171_v17 = vor.u32 %v2566_v3, %v2170_v14  ;;  %v2607_v43 = vld [vmem:[#allocation8 + $0x8] sm:$0xff] }
  0x9c   :  { %1369 = vmatpush.bf16.msra.mxu3 %v2315_v44  ;;  %1337 = vmatpush.bf16.msra.mxu0 %v1943_v0 }
  0x9e   :  { %1350 = vmatpush.bf16.msra.mxu2 %v2039_v1 }
  0x9f   :  { %1357 = vmatpush.bf16.msra.mxu1 %v2207_v57  ;;  %1338 = vmatmul.bf16.vlgmr.msra.gmra.mxu0 %v2867_v62  ;;  %v2146_v62 = vld [vmem:[#allocation5 + $0x320] sm:$0xf]  ;;  %v2619_v57 = vld [vmem:[#allocation8 + $0x68] sm:$0xff] }
  0xa0   :  { %1370 = vmatpush.bf16.msra.mxu3 %v2303_v58  ;;  %1389 = vmatpush.bf16.msrb.mxu0 %v2327_v2  ;;  %v2147_v32 = vor.u32 %v2560_v27, %v2146_v62  ;;  %v2617_v2 = vld [vmem:[#allocation8 + $0x58] sm:$0xff] }
  0xa1   :  { %1351 = vmatmul.bf16.vlgmr.msra.gmra.mxu2 %v2876_v20  ;;  %v2610_v20 = vld [vmem:[#allocation8 + $0x20] sm:$0xff] }
  0xa2   :  { %1597 = vmatpush.bf16.msrb.mxu2 %v2613_v4 }
  0xa3   :  { %1358 = vmatpush.bf16.msra.mxu1 %v2195_v5 }
  0xa4   :  { %1371 = vmatpush.bf16.msra.mxu3 %v2291_v7  ;;  %1610 = vmatpush.bf16.msra.mxu0 %v2621_v48  ;;  %v2616_v7 = vld [vmem:[#allocation8 + $0x50] sm:$0xff] }
  0xa6   :  { %1598 = vmatpush.bf16.msrb.mxu2 %v2612_v21 }
  0xa7   :  { %1359 = vmatpush.bf16.msra.mxu1 %v2183_v13 }
  0xa8   :  { %1372 = vmatpush.bf16.msra.mxu3 %v2279_v10  ;;  %1611 = vmatpush.bf16.msra.mxu0 %v2620_v50  ;;  %v2615_v10 = vld [vmem:[#allocation8 + $0x48] sm:$0xff] }
  0xaa   :  { %1599 = vmatpush.bf16.msrb.mxu2 %v2611_v31  ;;  %v2627_v31 = vld [vmem:[#allocation8 + $0xa8] sm:$0xff] }
  0xab   :  { %1360 = vmatpush.bf16.msra.mxu1 %v2171_v17 }
  0xac   :  { %1373 = vmatpush.bf16.msra.mxu3 %v2267_v18  ;;  %1612 = vmatpush.bf16.msra.mxu0 %v2619_v57 }
  0xae   :  { %1600 = vmatpush.bf16.msrb.mxu2 %v2610_v20 }
  0xaf   :  { %1361 = vmatpush.bf16.msra.mxu1 %v2159_v25  ;;  %2330 = vmatmul.msk.bf16.vlgmr.msrb.gmra.mxu0 %vm1118_vm0, %v2879_v6  ;;  %v328_v6 = vperm.slane %v2905_v47, 0 }
  0xb0   :  { %1374 = vmatpush.bf16.msra.mxu3 %v2255_v26  ;;  %1613 = vmatpush.bf16.msra.mxu0 %v2618_v60  ;;  %v2629_v26 = vld [vmem:[#allocation8 + $0xb8] sm:$0xff] }
  0xb2   :  { %1601 = vmatpush.bf16.msrb.mxu2 %v2609_v41 }
  0xb3   :  { %1362 = vmatpush.bf16.msra.mxu1 %v2147_v32 }
  0xb4   :  { %1375 = vmatpush.bf16.msra.mxu3 %v2243_v33  ;;  %1614 = vmatpush.bf16.msra.mxu0 %v2617_v2 }
  0xb6   :  { %1602 = vmatpush.bf16.msrb.mxu2 %v2608_v42  ;;  %v1131_v44 = vpop.f32.mrf.mxu0  ;;  %v2625_v42 = vld [vmem:[#allocation8 + $0x98] sm:$0xff] }
  0xb7   :  { %1363 = vmatpush.bf16.msra.mxu1 %v2135_v39  ;;  %v1132_v52 = vadd.f32 %v1131_v44, %v328_v6 }
  0xb8   :  { %1376 = vmatpush.bf16.msra.mxu3 %v2231_v40  ;;  %1615 = vmatpush.bf16.msra.mxu0 %v2616_v7 }
  0xb9   :  { %v1144_v46 = vpop.f32.mrf.mxu1 }
  0xba   :  { %1364 = vmatmul.bf16.vlgmr.msra.gmra.mxu1 %v2883_v29  ;;  %1603 = vmatpush.bf16.msrb.mxu2 %v2607_v43  ;;  %v1145_v54 = vadd.f32 %v1144_v46, %v1132_v52  ;;  %v2624_v43 = vld [vmem:[#allocation8 + $0x90] sm:$0xff]  ;;  %v330_v52 = vperm.slane %v2905_v47, 2  ;;  %v2637_v47 = vld [vmem:[#allocation10 + $0x38] sm:$0xff] }
  0xbb   :  { %1377 = vmatmul.bf16.vlgmr.msra.gmra.mxu3 %v2885_v34  ;;  %1623 = vmatpush.bf16.msrb.mxu1 %v2629_v26  ;;  %v2649_v26 = vld [vmem:[%s2925_s6] ss:$0 sm:$0xff] }
  0xbc   :  { %1616 = vmatpush.bf16.msra.mxu0 %v2615_v10  ;;  %1706 = vmatpush.bf16.msrb.mxu3 %v2637_v47  ;;  %v2632_v10 = vld [vmem:[#allocation10 + $0x10] sm:$0xff] }
  0xbe   :  { %1604 = vmatpush.bf16.msrb.mxu2 %v2606_v45  ;;  %v1133_v51 = vpop.f32.mrf.mxu0  ;;  %v2623_v45 = vld [vmem:[#allocation8 + $0x88] sm:$0xff] }
  0xbf   :  { %1624 = vmatpush.bf16.msrb.mxu1 %v2628_v28 }
  0xc0   :  { %v1157_v49 = vpop.f32.mrf.mxu2  ;;  %v1170_v34 = vpop.f32.mrf.mxu3  ;;  %1617 = vmatpush.bf16.msra.mxu0 %v2614_v15  ;;  %v2631_v15 = vld [vmem:[#allocation10 + $0x8] sm:$0xff] }
  0xc1   :  { %v1146_v29 = vpop.f32.mrf.mxu1  ;;  %v1158_v55 = vadd.f32 %v1157_v49, %v1145_v54  ;;  %v2622_v49 = vld [vmem:[#allocation8 + $0x80] sm:$0xff] }
  0xc3   :  { %v1171_v58 = vadd.f32 %v1170_v34, %v1158_v55  ;;  %1625 = vmatpush.bf16.msrb.mxu1 %v2627_v31 }
  0xc7   :  { %1626 = vmatpush.bf16.msrb.mxu1 %v2626_v37 }
  0xc8   :  { %v1159_v53 = vpop.f32.mrf.mxu2  ;;  %v1172_v56 = vpop.f32.mrf.mxu3 }
  0xcb   :  { %1627 = vmatpush.bf16.msrb.mxu1 %v2625_v42 }
  0xcf   :  { %1628 = vmatpush.bf16.msrb.mxu1 %v2624_v43 }
  0xd0   :  { %v1209_v59 = vpop.f32.mrf.mxu2 }
  0xd3   :  { %1629 = vmatpush.bf16.msrb.mxu1 %v2623_v45 }
  0xd6   :  { %v1183_v61 = vpop.f32.mrf.mxu0 }
  0xd7   :  { %v1184_v63 = vadd.f32 %v1183_v61, %v1171_v58  ;;  %1630 = vmatpush.bf16.msrb.mxu1 %v2622_v49 }
  0xd8   :  { %v1211_v5 = vpop.f32.mrf.mxu2 }
  0xd9   :  { %v1196_v0 = vpop.f32.mrf.mxu1 }
  0xda   :  { %v1197_v1 = vadd.f32 %v1196_v0, %v1184_v63 }
  0xdc   :  { %v1210_v4 = vadd.f32 %v1209_v59, %v1197_v1 }
  0xde   :  { %v1395_v8 = vmax.f32 %v1210_v4, 0.0  ;;  %v1222_v9 = vpop.f32.mrf.mxu3  ;;  %v1185_v11 = vpop.f32.mrf.mxu0 }
  0xdf   :  { %v1223_v18 = vadd.f32 %v1222_v9, %v329_v16  ;;  %v2636_v9 = vld [vmem:[#allocation10 + $0x30] sm:$0xff]  ;;  %v2635_v11 = vld [vmem:[#allocation10 + $0x28] sm:$0xff]  ;;  %v2630_v16 = vld [vmem:[#allocation10] sm:$0xff] }
  0xe0   :  { %v1398_v12 = vpack.c.bf16 %v1395_v8, %v1395_v8  ;;  %1707 = vmatpush.bf16.msrb.mxu3 %v2636_v9 }
  0xe1   :  { %v1198_v13 = vpop.f32.mrf.mxu1 }
  0xe2   :  { %1605 = vmatmul.bf16.vlgmr.msrb.gmra.mxu2 %v1398_v12  ;;  %v2634_v12 = vld [vmem:[#allocation10 + $0x20] sm:$0xff]  ;;  %v2633_v13 = vld [vmem:[#allocation10 + $0x18] sm:$0xff] }
  0xe4   :  { %v1235_v14 = vpop.f32.mrf.mxu2  ;;  %1708 = vmatpush.bf16.msrb.mxu3 %v2635_v11 }
  0xe5   :  { %v1236_v19 = vadd.f32 %v1235_v14, %v1223_v18 }
  0xe6   :  { %v1224_v3 = vpop.f32.mrf.mxu3 }
  0xe8   :  { %1709 = vmatpush.bf16.msrb.mxu3 %v2634_v12 }
  0xec   :  { %v1237_v17 = vpop.f32.mrf.mxu2  ;;  %1710 = vmatpush.bf16.msrb.mxu3 %v2633_v13 }
  0xed   :  { %v2648_v17 = vld [vmem:[%s2923_s4] ss:$0 sm:$0xff] }
  0xf0   :  { %1711 = vmatpush.bf16.msrb.mxu3 %v2632_v10 }
  0xf4   :  { %1712 = vmatpush.bf16.msrb.mxu3 %v2631_v15 }
  0xf6   :  { %v1248_v21 = vpop.f32.mrf.mxu0 }
  0xf7   :  { %v1261_v22 = vpop.f32.mrf.mxu1  ;;  %v1249_v23 = vadd.f32 %v1248_v21, %v1236_v19 }
  0xf8   :  { %1713 = vmatpush.bf16.msrb.mxu3 %v2630_v16 }
  0xf9   :  { %v1262_v24 = vadd.f32 %v1261_v22, %v1249_v23 }
  0xfe   :  { %v1274_v25 = vpop.f32.mrf.mxu3  ;;  %v1250_v62 = vpop.f32.mrf.mxu0 }
  0xff   :  { %v1263_v27 = vpop.f32.mrf.mxu1  ;;  %v1275_v30 = vadd.f32 %v1274_v25, %v1262_v24 }
 0x104   :  { %v1287_v20 = vpop.f32.mrf.mxu2 }
 0x105   :  { %v1288_v32 = vadd.f32 %v1287_v20, %v1275_v30 }
 0x106   :  { %v1276_v33 = vpop.f32.mrf.mxu3  ;;  %v1300_v35 = vpop.f32.mrf.mxu0 }
 0x107   :  { %v1301_v36 = vadd.f32 %v1300_v35, %v1288_v32 }
 0x109   :  { %v1396_v38 = vmax.f32 %v1301_v36, 0.0 }
 0x10b   :  { %v1399_v39 = vpack.c.bf16 %v1396_v38, %v1396_v38 }
 0x10c   :  { %v1289_v40 = vpop.f32.mrf.mxu2 }
 0x10d   :  { %1618 = vmatmul.bf16.vlgmr.msra.gmra.mxu0 %v1399_v39 }
 0x10e   :  { %v1302_v41 = vpop.f32.mrf.mxu0 }
 0x117   :  { %v1313_v44 = vpop.f32.mrf.mxu1 }
 0x118   :  { %v1314_v34 = vadd.f32 %v1313_v44, %v330_v52 }
 0x11c   :  { %v1339_v48 = vpop.f32.mrf.mxu0 }
 0x11e   :  { %v1326_v46 = vpop.f32.mrf.mxu3 }
 0x11f   :  { %v1315_v6 = vpop.f32.mrf.mxu1  ;;  %v1327_v55 = vadd.f32 %v1326_v46, %v1314_v34 }
 0x121   :  { %v1340_v56 = vadd.f32 %v1339_v48, %v1327_v55 }
 0x124   :  { %v1352_v50 = vpop.f32.mrf.mxu2  ;;  %v1341_v29 = vpop.f32.mrf.mxu0 }
 0x125   :  { %v1353_v59 = vadd.f32 %v1352_v50, %v1340_v56 }
 0x126   :  { %v1328_v51 = vpop.f32.mrf.mxu3 }
 0x12c   :  { %v1354_v53 = vpop.f32.mrf.mxu2  ;;  %v1391_v54 = vpop.f32.mrf.mxu0 }
 0x134   :  { %v1393_v58 = vpop.f32.mrf.mxu0 }
 0x137   :  { %v1365_v57 = vpop.f32.mrf.mxu1 }
 0x138   :  { %v1366_v60 = vadd.f32 %v1365_v57, %v1353_v59 }
 0x13e   :  { %v1378_v61 = vpop.f32.mrf.mxu3 }
 0x13f   :  { %v1379_v63 = vadd.f32 %v1378_v61, %v1366_v60  ;;  %v1367_v0 = vpop.f32.mrf.mxu1 }
 0x141   :  { %v1392_v1 = vadd.f32 %v1391_v54, %v1379_v63 }
 0x143   :  { %v1397_v2 = vmax.f32 %v1392_v1, 0.0 }
 0x145   :  { %v1400_v4 = vpack.c.bf16 %v1397_v2, %v1397_v2 }
 0x146   :  { %v1380_v5 = vpop.f32.mrf.mxu3 }
 0x147   :  { %1631 = vmatmul.bf16.vlgmr.msrb.gmra.mxu1 %v1400_v4 }
 0x165   :  { %v1606_v7 = vpop.f32.mrf.mxu2 }
 0x166   :  { %v1607_v18 = vadd.f32 %v2648_v17, %v1606_v7 }
 0x16d   :  { %v1608_v8 = vpop.f32.mrf.mxu2 }
 0x18a   :  { %v1619_v14 = vpop.f32.mrf.mxu0 }
 0x18b   :  { %v1620_v19 = vadd.f32 %v1619_v14, %v1607_v18 }
 0x192   :  { %v1621_v3 = vpop.f32.mrf.mxu0 }
 0x1c4   :  { %v1632_v21 = vpop.f32.mrf.mxu1 }
 0x1c5   :  { %v1633_v22 = vadd.f32 %v1632_v21, %v1620_v19 }
 0x1c7   :  { %v1636_v23 = vmax.f32 %v1633_v22, 0.0 }
 0x1c9   :  { %v1637_v24 = vpack.c.bf16 %v1636_v23, %v1636_v23 }
 0x1cb   :  { %1714 = vmatmul.bf16.vlgmr.msrb.gmra.mxu3 %v1637_v24 }
 0x1cc   :  { %v1634_v25 = vpop.f32.mrf.mxu1 }
 0x24e   :  { %v1715_v62 = vpop.f32.mrf.mxu3 }
 0x24f   :  { %v1716_v27 = vadd.f32 %v2649_v26, %v1715_v62 }
 0x251   :  { %v1719_v28 = vpack.c.bf16 %v1716_v27, %v1716_v27 }
 0x253   :  { %1720 = vst [vmem:[#allocation11] sm:$0x1] %v1719_v28 }
 0x254   :  { %1731 = dma.vmem_to_hbm [thread:$0]  %s1727_s30, 16, %s1729_s10, [#allocation4]  }
 0x256   :  { %v1717_v30 = vpop.f32.mrf.mxu3 }
 0x257   :  { %2800 = dma.done.wait [#allocation4], 16  }
 0x258   :  { %2801 = vsyncadd [#allocation4], 4294967280 }
 0x259   :  { %1736 = vsyncpa [#allocation3], 1 }
 0x25a   :  { %1737 = vsyncpa [#allocation6], 1 }
 0x25b   :  { %1738 = vsyncpa [#allocation9], 1 }
 0x25c   :  { %1739 = vsyncpa [#allocation4], 1 }

</bundles_post_ra>
